<compile_context>
chip_gen: v7x
topology: tpu7x:2x2x1
jax: 0.10.0
libtpu: 0.0.40
codegen_flags: <defaults>
</compile_context>

<pallas_src>
from functools import partial

import jax
import jax.numpy as jnp
from jax.experimental import pallas as pl
from jax.experimental.pallas import tpu as pltpu

LANE = 128
SUBLANE_BF16 = 16  # bf16 packs 16 sublanes per vreg


def _round_up(x, m):
    return ((x + m - 1) // m) * m


def _choose_tiling(B, tb):
    """Pick (TB, B_pad): TB multiple of 16, >=2 grid steps when batch allows."""
    Bp = _round_up(max(B, SUBLANE_BF16), SUBLANE_BF16)
    TB = min(tb, Bp)
    # v7x has 2 TensorCores: make sure the "parallel" batch axis has >= 2 steps.
    if Bp > SUBLANE_BF16 and TB >= Bp:
        TB = _round_up((Bp + 1) // 2, SUBLANE_BF16)
    TB = _round_up(TB, SUBLANE_BF16)
    B_pad = _round_up(Bp, TB)
    return TB, B_pad


def _mlp_kernel(x_ref, w1_ref, b1_ref, w2_ref, b2_ref, w3_ref, b3_ref, o_ref):
    # x arrives as f32 straight from HBM (no host-side pad/cast pass); cast to
    # bf16 here so the MXU sees bf16 inputs with f32 accumulation.
    x = x_ref[...].astype(jnp.bfloat16)
    # Layer 1: (TB, K) @ (K, 128)
    h1 = jnp.dot(x, w1_ref[...], preferred_element_type=jnp.float32)
    h1 = jnp.maximum(h1 + b1_ref[...], 0.0).astype(jnp.bfloat16)
    # Layer 2: (TB, 128) @ (128, 128)
    h2 = jnp.dot(h1, w2_ref[...], preferred_element_type=jnp.float32)
    h2 = jnp.maximum(h2 + b2_ref[...], 0.0).astype(jnp.bfloat16)
    # Layer 3: (TB, 128) @ (128, 128) -> lane-dense f32 output block.
    o_ref[...] = (
        jnp.dot(h2, w3_ref[...], preferred_element_type=jnp.float32) + b3_ref[...]
    )


def prepare_params(params):
    """Pad/cast torch-shaped params once per parameter update (hoisted out of
    the per-step forward). Padded cols/rows are exact zeros."""
    w1, b1, w2, b2, w3, b3 = params
    in_features, width = w1.shape
    n_actions = w3.shape[1]

    K = _round_up(in_features, LANE)
    Wp = _round_up(width, LANE)
    Np = _round_up(n_actions, LANE)

    w1p = jnp.zeros((K, Wp), jnp.bfloat16).at[:in_features, :width].set(
        w1.astype(jnp.bfloat16))
    w2p = jnp.zeros((Wp, Wp), jnp.bfloat16).at[:width, :width].set(
        w2.astype(jnp.bfloat16))
    w3p = jnp.zeros((Wp, Np), jnp.bfloat16).at[:width, :n_actions].set(
        w3.astype(jnp.bfloat16))
    b1p = jnp.zeros((1, Wp), jnp.float32).at[:, :width].set(b1.reshape(1, -1))
    b2p = jnp.zeros((1, Wp), jnp.float32).at[:, :width].set(b2.reshape(1, -1))
    b3p = jnp.zeros((1, Np), jnp.float32).at[:, :n_actions].set(b3.reshape(1, -1))
    return (w1p, b1p, w2p, b2p, w3p, b3p)


@partial(jax.jit, static_argnames=("n_actions", "tb"))
def dqn_mlp_forward(x, padded_params, *, n_actions, tb=1024):
    """DQN MLP forward. x: (B, ...) f32; padded_params from prepare_params()."""
    w1p, b1p, w2p, b2p, w3p, b3p = padded_params
    B = x.shape[0]
    x_flat = x.reshape(B, -1)          # view of the NCHW input, no copy
    in_features = x_flat.shape[1]
    K, Wp = w1p.shape
    Np = w3p.shape[1]
    assert in_features <= K

    TB, B_pad = _choose_tiling(B, tb)
    pad_rows = B_pad - B
    pad_cols = K - in_features         # 0 when in_features % 128 == 0 (e.g. 1024)
    if pad_rows or pad_cols:
        # Only tail rows / feature remainder; no-op copy for the common case of
        # power-of-two batches and 128-multiple features.
        x_flat = jnp.pad(x_flat, ((0, pad_rows), (0, pad_cols)))

    grid = (B_pad // TB,)
    resident = lambda i: (0, 0)  # weights/biases: same block every step -> VMEM-resident

    # Advisory cost estimate: dominant bytes are the f32 x read + f32 out write.
    flops = 2 * B_pad * (K * Wp + Wp * Wp + Wp * Np)
    bytes_accessed = (
        B_pad * K * 4 + B_pad * Np * 4
        + (K * Wp + Wp * Wp + Wp * Np) * 2
        + (2 * Wp + Np) * 4
    )

    out = pl.pallas_call(
        _mlp_kernel,
        out_shape=jax.ShapeDtypeStruct((B_pad, Np), jnp.float32),
        grid=grid,
        in_specs=[
            pl.BlockSpec((TB, K), lambda i: (i, 0)),   # x: batch-tiled, double-buffered
            pl.BlockSpec((K, Wp), resident),           # W1
            pl.BlockSpec((1, Wp), resident),           # b1
            pl.BlockSpec((Wp, Wp), resident),          # W2
            pl.BlockSpec((1, Wp), resident),           # b2
            pl.BlockSpec((Wp, Np), resident),          # W3
            pl.BlockSpec((1, Np), resident),           # b3
        ],
        out_specs=pl.BlockSpec((TB, Np), lambda i: (i, 0)),
        compiler_params=pltpu.CompilerParams(
            dimension_semantics=("parallel",),  # shard batch tiles across TCs (v7x)
        ),
        cost_estimate=pl.CostEstimate(
            flops=flops, transcendentals=0, bytes_accessed=bytes_accessed
        ),
    )(x_flat, w1p, b1p, w2p, b2p, w3p, b3p)

    # Padded action columns are exact zeros; this slice must be kept (under jit
    # it fuses into the consumer). Never argmax the padded 128-wide block.
    return out[:B, :n_actions]


def init_params(key, in_features, width, n_actions):
    """Deterministic init (uniform, fan_in scaled, like torch default Linear)."""
    ks = jax.random.split(key, 6)

    def lin(kw, kb, fan_in, fan_out):
        bound = 1.0 / jnp.sqrt(jnp.float32(fan_in))
        w = jax.random.uniform(kw, (fan_in, fan_out), jnp.float32, -bound, bound)
        b = jax.random.uniform(kb, (1, fan_out), jnp.float32, -bound, bound)
        return w, b

    w1, b1 = lin(ks[0], ks[1], in_features, width)
    w2, b2 = lin(ks[2], ks[3], width, width)
    w3, b3 = lin(ks[4], ks[5], width, n_actions)
    return (w1, b1, w2, b2, w3, b3)


if __name__ == "__main__":
    key = jax.random.PRNGKey(0)
    k_x, k_p = jax.random.split(key)

    # Small shapes: batch=2, input_shape=(4, 16, 16) -> flattened 1024,
    # width=64, n_actions=6.
    B, C, H, W = 2, 4, 16, 16
    width = 64
    n_actions = 6
    in_features = C * H * W

    x = jax.random.normal(k_x, (B, C, H, W), jnp.float32)
    params = init_params(k_p, in_features, width, n_actions)

    # Pad/cast weights once (per parameter update), then run the forward.
    padded_params = prepare_params(params)
    out = dqn_mlp_forward(x, padded_params, n_actions=n_actions)
    out = jax.block_until_ready(out)

    # Pure-JAX f32 reference of the forward semantics (kernel uses bf16 matmul
    # inputs with f32 accumulation, so allow bf16-level tolerance).
    w1, b1, w2, b2, w3, b3 = params
    xf = x.reshape(B, -1)
    ref = jnp.maximum(xf @ w1 + b1, 0.0)
    ref = jnp.maximum(ref @ w2 + b2, 0.0)
    ref = ref @ w3 + b3
    assert out.shape == (B, n_actions)
    assert jnp.allclose(out, ref, atol=2e-2, rtol=2e-2), (
        float(jnp.max(jnp.abs(out - ref)))
    )

    print("KERNEL_OK")
</pallas_src>

<mosaic_0001>
module attributes {stable_mosaic.version = 11 : i64} {
  func.func @_mlp_kernel(%arg0: i32, %arg1: memref<16x1024xf32, #tpu.memory_space<vmem>>, %arg2: memref<1024x128xbf16, #tpu.memory_space<vmem>>, %arg3: memref<1x128xf32, #tpu.memory_space<vmem>>, %arg4: memref<128x128xbf16, #tpu.memory_space<vmem>>, %arg5: memref<1x128xf32, #tpu.memory_space<vmem>>, %arg6: memref<128x128xbf16, #tpu.memory_space<vmem>>, %arg7: memref<1x128xf32, #tpu.memory_space<vmem>>, %arg8: memref<16x128xf32, #tpu.memory_space<vmem>>) attributes {dimension_semantics = [#tpu.dimension_semantics<parallel>], iteration_bounds = array<i64: 1>, scalar_prefetch = 0 : i64, scratch_operands = 0 : i64, tpu.core_type = #tpu.core_type<tc>, window_params = [{transform_indices = @transform_0, window_bounds = array<i64: 16, 1024>}, {pipeline_mode = #tpu.pipeline_mode<synchronous>, transform_indices = @transform_1, window_bounds = array<i64: 1024, 128>}, {pipeline_mode = #tpu.pipeline_mode<synchronous>, transform_indices = @transform_2, window_bounds = array<i64: 1, 128>}, {pipeline_mode = #tpu.pipeline_mode<synchronous>, transform_indices = @transform_3, window_bounds = array<i64: 128, 128>}, {pipeline_mode = #tpu.pipeline_mode<synchronous>, transform_indices = @transform_4, window_bounds = array<i64: 1, 128>}, {pipeline_mode = #tpu.pipeline_mode<synchronous>, transform_indices = @transform_5, window_bounds = array<i64: 128, 128>}, {pipeline_mode = #tpu.pipeline_mode<synchronous>, transform_indices = @transform_6, window_bounds = array<i64: 1, 128>}, {transform_indices = @transform_7, window_bounds = array<i64: 16, 128>}]} {
    %c0 = arith.constant 0 : index
    %c0_0 = arith.constant 0 : index
    %0 = vector.load %arg1[%c0, %c0_0] : memref<16x1024xf32, #tpu.memory_space<vmem>>, vector<16x1024xf32>
    %1 = arith.truncf %0 : vector<16x1024xf32> to vector<16x1024xbf16>
    %c0_1 = arith.constant 0 : index
    %c0_2 = arith.constant 0 : index
    %2 = vector.load %arg2[%c0_1, %c0_2] : memref<1024x128xbf16, #tpu.memory_space<vmem>>, vector<1024x128xbf16>
    %cst = arith.constant dense<0.000000e+00> : vector<16x128xf32>
    %3 = tpu.matmul %1, %2, %cst {dimension_numbers = #tpu.dot_dimension_numbers<[1], [0], [0], [1], [0, 0, 1, 1], [], []>} : vector<16x1024xbf16>, vector<1024x128xbf16>, vector<16x128xf32> -> vector<16x128xf32>
    %c0_3 = arith.constant 0 : index
    %c0_4 = arith.constant 0 : index
    %4 = vector.load %arg3[%c0_3, %c0_4] : memref<1x128xf32, #tpu.memory_space<vmem>>, vector<1x128xf32>
    %5 = vector.broadcast %4 : vector<1x128xf32> to vector<16x128xf32>
    %6 = arith.addf %3, %5 : vector<16x128xf32>
    %cst_5 = arith.constant 0.000000e+00 : f32
    %7 = vector.broadcast %cst_5 : f32 to vector<16x128xf32>
    %8 = arith.maximumf %6, %7 : vector<16x128xf32>
    %9 = arith.truncf %8 : vector<16x128xf32> to vector<16x128xbf16>
    %c0_6 = arith.constant 0 : index
    %c0_7 = arith.constant 0 : index
    %10 = vector.load %arg4[%c0_6, %c0_7] : memref<128x128xbf16, #tpu.memory_space<vmem>>, vector<128x128xbf16>
    %cst_8 = arith.constant dense<0.000000e+00> : vector<16x128xf32>
    %11 = tpu.matmul %9, %10, %cst_8 {dimension_numbers = #tpu.dot_dimension_numbers<[1], [0], [0], [1], [0, 0, 1, 1], [], []>} : vector<16x128xbf16>, vector<128x128xbf16>, vector<16x128xf32> -> vector<16x128xf32>
    %c0_9 = arith.constant 0 : index
    %c0_10 = arith.constant 0 : index
    %12 = vector.load %arg5[%c0_9, %c0_10] : memref<1x128xf32, #tpu.memory_space<vmem>>, vector<1x128xf32>
    %13 = vector.broadcast %12 : vector<1x128xf32> to vector<16x128xf32>
    %14 = arith.addf %11, %13 : vector<16x128xf32>
    %cst_11 = arith.constant 0.000000e+00 : f32
    %15 = vector.broadcast %cst_11 : f32 to vector<16x128xf32>
    %16 = arith.maximumf %14, %15 : vector<16x128xf32>
    %17 = arith.truncf %16 : vector<16x128xf32> to vector<16x128xbf16>
    %c0_12 = arith.constant 0 : index
    %c0_13 = arith.constant 0 : index
    %18 = vector.load %arg6[%c0_12, %c0_13] : memref<128x128xbf16, #tpu.memory_space<vmem>>, vector<128x128xbf16>
    %cst_14 = arith.constant dense<0.000000e+00> : vector<16x128xf32>
    %19 = tpu.matmul %17, %18, %cst_14 {dimension_numbers = #tpu.dot_dimension_numbers<[1], [0], [0], [1], [0, 0, 1, 1], [], []>} : vector<16x128xbf16>, vector<128x128xbf16>, vector<16x128xf32> -> vector<16x128xf32>
    %c0_15 = arith.constant 0 : index
    %c0_16 = arith.constant 0 : index
    %20 = vector.load %arg7[%c0_15, %c0_16] : memref<1x128xf32, #tpu.memory_space<vmem>>, vector<1x128xf32>
    %21 = vector.broadcast %20 : vector<1x128xf32> to vector<16x128xf32>
    %22 = arith.addf %19, %21 : vector<16x128xf32>
    %c0_17 = arith.constant 0 : index
    %c0_18 = arith.constant 0 : index
    %23 = vector.load %arg8[%c0_17, %c0_18] : memref<16x128xf32, #tpu.memory_space<vmem>>, vector<16x128xf32>
    tpu.vector_store %arg8[%c0_17, %c0_18], %22 {strides = array<i32>} : memref<16x128xf32, #tpu.memory_space<vmem>>, vector<16x128xf32>,
    return
  }
  func.func @transform_0(%arg0: i32) -> (i32, i32) {
    %c0_i32 = arith.constant 0 : i32
    %c0_i32_0 = arith.constant 0 : i32
    return %arg0, %c0_i32 : i32, i32
  }
  func.func @transform_1(%arg0: i32) -> (i32, i32) {
    %c0_i32 = arith.constant 0 : i32
    %c0_i32_0 = arith.constant 0 : i32
    %c0_i32_1 = arith.constant 0 : i32
    return %c0_i32, %c0_i32_0 : i32, i32
  }
  func.func @transform_2(%arg0: i32) -> (i32, i32) {
    %c0_i32 = arith.constant 0 : i32
    %c0_i32_0 = arith.constant 0 : i32
    %c0_i32_1 = arith.constant 0 : i32
    return %c0_i32, %c0_i32_0 : i32, i32
  }
  func.func @transform_3(%arg0: i32) -> (i32, i32) {
    %c0_i32 = arith.constant 0 : i32
    %c0_i32_0 = arith.constant 0 : i32
    %c0_i32_1 = arith.constant 0 : i32
    return %c0_i32, %c0_i32_0 : i32, i32
  }
  func.func @transform_4(%arg0: i32) -> (i32, i32) {
    %c0_i32 = arith.constant 0 : i32
    %c0_i32_0 = arith.constant 0 : i32
    %c0_i32_1 = arith.constant 0 : i32
    return %c0_i32, %c0_i32_0 : i32, i32
  }
  func.func @transform_5(%arg0: i32) -> (i32, i32) {
    %c0_i32 = arith.constant 0 : i32
    %c0_i32_0 = arith.constant 0 : i32
    %c0_i32_1 = arith.constant 0 : i32
    return %c0_i32, %c0_i32_0 : i32, i32
  }
  func.func @transform_6(%arg0: i32) -> (i32, i32) {
    %c0_i32 = arith.constant 0 : i32
    %c0_i32_0 = arith.constant 0 : i32
    %c0_i32_1 = arith.constant 0 : i32
    return %c0_i32, %c0_i32_0 : i32, i32
  }
  func.func @transform_7(%arg0: i32) -> (i32, i32) {
    %c0_i32 = arith.constant 0 : i32
    %c0_i32_0 = arith.constant 0 : i32
    return %arg0, %c0_i32 : i32, i32
  }
}

</mosaic_0001>

<bundles_post_ra>
// kernel: dqn_mlp_forward.1
= control target key start
LH: loop header
LB: loop body
LE: loop exit
PB: predicated region body
PF: predicated region fallthrough
CT: control target
= control target key end

     0   :  { %12 = vsyncpa [#allocation3], 0  ;;  %s1323_s24 = smov [#allocation2]   ;;  %s1509_s0 = inlined_call_operand.vmem [shape: f32[16,1024], index: 0, kind: input, shape index: {}]   ;;  %s1510_s1 = inlined_call_operand.hbm [shape: bf16[1024,128], index: 1, kind: input, shape index: {}]   ;;  %s1511_s2 = inlined_call_operand.vmem [shape: f32[1,128], index: 2, kind: input, shape index: {}]   ;;  %s1512_s3 = inlined_call_operand.vmem [shape: bf16[128,128], index: 3, kind: input, shape index: {}]   ;;  %s1513_s4 = inlined_call_operand.vmem [shape: f32[1,128], index: 4, kind: input, shape index: {}]   ;;  %s1514_s5 = inlined_call_operand.vmem [shape: bf16[128,128], index: 5, kind: input, shape index: {}]   ;;  %s1515_s6 = inlined_call_operand.vmem [shape: f32[1,128], index: 6, kind: input, shape index: {}]   ;;  %s1516_s7 = inlined_call_operand.vmem [shape: f32[16,128], index: 7, kind: output, shape index: {}]  }
   0x1   :  { %s20_s25 = sshll.u32 %s1323_s24, 4  ;;  %s1299_s28 = scalar_lea.hbm %s1510_s1, 8192  ;;  %s21_s25 = int_to_ptr.vmem [resolvable:$true] %s20_s25 }
   0x2   :  { %p1300_p0 = scmp.ne.s32.totalorder %s1510_s1, %s1299_s28  ;;  %p1303_p1 = scmp.lt.u32.totalorder %s1299_s28, %s1510_s1 }
   0x4   :  { %p1305_p2 = pnand %p1303_p1, %p1300_p0 }
   0x6   :  { %1308 = shalt.err (!%p1305_p2)
}
   0x7   :  { %s1309_s10 = scalar_lea.vmem %s21_s25, 8192  ;;  %p1314_p4 = scmp.lt.s32.totalorder %s21_s25, %s21_s25 }
   0x8   :  { %p1310_p3 = scmp.ne.s32.totalorder %s21_s25, %s1309_s10  ;;  %p1315_p5 = scmp.lt.s32.totalorder %s1309_s10, %s1309_s10 }
   0xa   :  { %p1316_p6 = por %p1315_p5, %p1314_p4 }
   0xc   :  { %p1317_p7 = pnand %p1316_p6, %p1310_p3 }
   0xe   :  { %1320 = shalt.err (!%p1317_p7)
}
   0xf   :  { %s1324_s11 = smov 64   ;;  %s1325_s12 = smov 4  }
  0x10   :  { %26 = dma.hbm_to_vmem [thread:$0]  %s1510_s1, 8192, %s21_s25, [#allocation3], %s1324_s11, %s1324_s11, %s1325_s12  }
  0x11   :  { %1321 = dma.done.wait [#allocation3], 8192  }
  0x12   :  { %1322 = vsyncadd [#allocation3], 4294959104  ;;  %v1219_v0 = vld [vmem:[#allocation2 + $0x40] sm:$0xff]   ;;  %v1223_v4 = vld [vmem:[#allocation2 + $0x48] sm:$0xff]   ;;  %vm1327_vm0 = vmmov 0  }
  0x13   :  { %v1220_v1 = vld [vmem:[#allocation2 + $0xc0] sm:$0xff]   ;;  %1068 = vmatprep.subr.bf16.mxu0 %v1219_v0  ;;  %v1224_v5 = vld [vmem:[#allocation2 + $0xc8] sm:$0xff]   ;;  %v1227_v8 = vld [vmem:[#allocation2 + $0x50] sm:$0xff]  }
  0x14   :  { %v1221_v2 = vld [vmem:[#allocation2] sm:$0xff]   ;;  %1090 = vmatprep.subr.bf16.mxu1 %v1220_v1  ;;  %v1225_v6 = vld [vmem:[#allocation2 + $0x8] sm:$0xff]   ;;  %v1228_v9 = vld [vmem:[#allocation2 + $0xd0] sm:$0xff]  }
  0x15   :  { %v1222_v3 = vld [vmem:[#allocation2 + $0x80] sm:$0xff]   ;;  %1069 = vmatpush3.bf16.msra.mxu0 %v1221_v2  ;;  %v1226_v7 = vld [vmem:[#allocation2 + $0x88] sm:$0xff]   ;;  %v1229_v10 = vld [vmem:[#allocation2 + $0x10] sm:$0xff]  }
  0x16   :  { %1091 = vmatpush3.bf16.msra.mxu1 %v1222_v3  ;;  %1070 = vmatprep.subr.bf16.mxu0 %v1223_v4  ;;  %v1230_v11 = vld [vmem:[#allocation2 + $0x90] sm:$0xff]   ;;  %v1231_v12 = vld [vmem:[#allocation2 + $0x58] sm:$0xff]   ;;  %v1235_v16 = vld [vmem:[#allocation2 + $0x60] sm:$0xff]  }
  0x17   :  { %1092 = vmatprep.subr.bf16.mxu1 %v1224_v5  ;;  %v1232_v13 = vld [vmem:[#allocation2 + $0xd8] sm:$0xff]   ;;  %v1236_v17 = vld [vmem:[#allocation2 + $0xe0] sm:$0xff]   ;;  %v1239_v20 = vld [vmem:[#allocation2 + $0x68] sm:$0xff]  }
  0x18   :  { %v1233_v14 = vld [vmem:[#allocation2 + $0x18] sm:$0xff]   ;;  %v1237_v18 = vld [vmem:[#allocation2 + $0x20] sm:$0xff]   ;;  %v1240_v21 = vld [vmem:[#allocation2 + $0xe8] sm:$0xff]  }
  0x19   :  { %1071 = vmatpush3.bf16.msra.mxu0 %v1225_v6  ;;  %v1234_v15 = vld [vmem:[#allocation2 + $0x98] sm:$0xff]   ;;  %v1238_v19 = vld [vmem:[#allocation2 + $0xa0] sm:$0xff]   ;;  %v1241_v22 = vld [vmem:[#allocation2 + $0x28] sm:$0xff]  }
  0x1a   :  { %1093 = vmatpush3.bf16.msra.mxu1 %v1226_v7  ;;  %1072 = vmatprep.subr.bf16.mxu0 %v1227_v8  ;;  %v1242_v23 = vld [vmem:[#allocation2 + $0xa8] sm:$0xff]   ;;  %v1243_v24 = vld [vmem:[#allocation2 + $0x70] sm:$0xff]   ;;  %v1247_v28 = vld [vmem:[#allocation2 + $0x78] sm:$0xff]  }
  0x1b   :  { %1094 = vmatprep.subr.bf16.mxu1 %v1228_v9  ;;  %v1244_v25 = vld [vmem:[#allocation2 + $0xf0] sm:$0xff]   ;;  %v1248_v29 = vld [vmem:[#allocation2 + $0xf8] sm:$0xff]   ;;  %v42_v32 = vld [vmem:[%s1509_s0 + $0x8] sm:$0xff] }
  0x1c   :  { %v1245_v26 = vld [vmem:[#allocation2 + $0x30] sm:$0xff]   ;;  %v1249_v30 = vld [vmem:[#allocation2 + $0x38] sm:$0xff]   ;;  %v50_v33 = vld [vmem:[%s1509_s0 + $0x48] sm:$0xff] }
  0x1d   :  { %1073 = vmatpush3.bf16.msra.mxu0 %v1229_v10  ;;  %v1246_v27 = vld [vmem:[#allocation2 + $0xb0] sm:$0xff]   ;;  %v1250_v31 = vld [vmem:[#allocation2 + $0xb8] sm:$0xff]   ;;  %v58_v35 = vpack.c.bf16 %v50_v33, %v42_v32  ;;  %v41_v37 = vld [vmem:[%s1509_s0] sm:$0xff] }
  0x1e   :  { %1095 = vmatpush3.bf16.msra.mxu1 %v1230_v11  ;;  %1074 = vmatprep.subr.bf16.mxu0 %v1231_v12  ;;  %v44_v34 = vld [vmem:[%s1509_s0 + $0x18] sm:$0xff]  ;;  %v49_v38 = vld [vmem:[%s1509_s0 + $0x40] sm:$0xff]  ;;  %v43_v41 = vld [vmem:[%s1509_s0 + $0x10] sm:$0xff] }
  0x1f   :  { %1096 = vmatprep.subr.bf16.mxu1 %v1232_v13  ;;  %v52_v36 = vld [vmem:[%s1509_s0 + $0x58] sm:$0xff]  ;;  %v57_v40 = vpack.c.bf16 %v49_v38, %v41_v37  ;;  %v51_v42 = vld [vmem:[%s1509_s0 + $0x50] sm:$0xff]  ;;  %616 = vmatprep.mubr.bf16.mxu0 %v58_v35  ;;  %v1251_v44 = vld [vmem:[#allocation2 + $0x140] sm:$0xff]  }
  0x20   :  { %v60_v39 = vpack.c.bf16 %v52_v36, %v44_v34  ;;  %v59_v43 = vpack.c.bf16 %v51_v42, %v43_v41  ;;  %v1252_v45 = vld [vmem:[#allocation2 + $0x1c0] sm:$0xff]   ;;  %v1255_v48 = vld [vmem:[#allocation2 + $0x148] sm:$0xff]   ;;  %v1259_v52 = vld [vmem:[#allocation2 + $0x150] sm:$0xff]  }
  0x21   :  { %1075 = vmatpush3.bf16.msra.mxu0 %v1233_v14  ;;  %v1253_v46 = vld [vmem:[#allocation2 + $0x100] sm:$0xff]   ;;  %v1256_v49 = vld [vmem:[#allocation2 + $0x1c8] sm:$0xff]   ;;  %v1260_v53 = vld [vmem:[#allocation2 + $0x1d0] sm:$0xff]  }
  0x22   :  { %1097 = vmatpush3.bf16.msra.mxu1 %v1234_v15  ;;  %1076 = vmatprep.subr.bf16.mxu0 %v1235_v16  ;;  %v1254_v47 = vld [vmem:[#allocation2 + $0x180] sm:$0xff]   ;;  %v1257_v50 = vld [vmem:[#allocation2 + $0x108] sm:$0xff]   ;;  %v1261_v54 = vld [vmem:[#allocation2 + $0x110] sm:$0xff]  }
  0x23   :  { %1098 = vmatprep.subr.bf16.mxu1 %v1236_v17  ;;  %657 = vmatprep.mubr.bf16.mxu1 %v60_v39  ;;  %v1258_v51 = vld [vmem:[#allocation2 + $0x188] sm:$0xff]   ;;  %v1262_v55 = vld [vmem:[#allocation2 + $0x190] sm:$0xff]   ;;  %v1263_v56 = vld [vmem:[#allocation2 + $0x158] sm:$0xff]  }
  0x24   :  { %v1264_v57 = vld [vmem:[#allocation2 + $0x1d8] sm:$0xff]   ;;  %v1267_v60 = vld [vmem:[#allocation2 + $0x160] sm:$0xff]   ;;  %v1271_v0 = vld [vmem:[#allocation2 + $0x168] sm:$0xff]  }
  0x25   :  { %1077 = vmatpush3.bf16.msra.mxu0 %v1237_v18  ;;  %v1265_v58 = vld [vmem:[#allocation2 + $0x118] sm:$0xff]   ;;  %v1268_v61 = vld [vmem:[#allocation2 + $0x1e0] sm:$0xff]   ;;  %v1272_v1 = vld [vmem:[#allocation2 + $0x1e8] sm:$0xff]  }
  0x26   :  { %1099 = vmatpush3.bf16.msra.mxu1 %v1238_v19  ;;  %1078 = vmatprep.subr.bf16.mxu0 %v1239_v20  ;;  %v1266_v59 = vld [vmem:[#allocation2 + $0x198] sm:$0xff]   ;;  %v1269_v62 = vld [vmem:[#allocation2 + $0x120] sm:$0xff]   ;;  %v1273_v2 = vld [vmem:[#allocation2 + $0x128] sm:$0xff]  }
  0x27   :  { %1100 = vmatprep.subr.bf16.mxu1 %v1240_v21  ;;  %v1270_v63 = vld [vmem:[#allocation2 + $0x1a0] sm:$0xff]   ;;  %v1274_v3 = vld [vmem:[#allocation2 + $0x1a8] sm:$0xff]   ;;  %v1275_v4 = vld [vmem:[#allocation2 + $0x170] sm:$0xff]  }
  0x28   :  { %v1276_v5 = vld [vmem:[#allocation2 + $0x1f0] sm:$0xff]   ;;  %v1279_v8 = vld [vmem:[#allocation2 + $0x178] sm:$0xff]   ;;  %v46_v12 = vld [vmem:[%s1509_s0 + $0x28] sm:$0xff] }
  0x29   :  { %1079 = vmatpush3.bf16.msra.mxu0 %v1241_v22  ;;  %v1277_v6 = vld [vmem:[#allocation2 + $0x130] sm:$0xff]   ;;  %v1280_v9 = vld [vmem:[#allocation2 + $0x1f8] sm:$0xff]   ;;  %v54_v13 = vld [vmem:[%s1509_s0 + $0x68] sm:$0xff] }
  0x2a   :  { %1101 = vmatpush3.bf16.msra.mxu1 %v1242_v23  ;;  %1080 = vmatprep.subr.bf16.mxu0 %v1243_v24  ;;  %v1278_v7 = vld [vmem:[#allocation2 + $0x1b0] sm:$0xff]   ;;  %v1281_v10 = vld [vmem:[#allocation2 + $0x138] sm:$0xff]   ;;  %v62_v16 = vpack.c.bf16 %v54_v13, %v46_v12  ;;  %v45_v18 = vld [vmem:[%s1509_s0 + $0x20] sm:$0xff] }
  0x2b   :  { %1102 = vmatprep.subr.bf16.mxu1 %v1244_v25  ;;  %v1282_v11 = vld [vmem:[#allocation2 + $0x1b8] sm:$0xff]   ;;  %v53_v19 = vld [vmem:[%s1509_s0 + $0x60] sm:$0xff]  ;;  %v47_v20 = vld [vmem:[%s1509_s0 + $0x30] sm:$0xff]  ;;  %v1326_v25 = vmov 0.0  }
  0x2c   :  { %v48_v14 = vld [vmem:[%s1509_s0 + $0x38] sm:$0xff]  ;;  %v61_v21 = vpack.c.bf16 %v53_v19, %v45_v18  ;;  %v55_v22 = vld [vmem:[%s1509_s0 + $0x70] sm:$0xff]  ;;  %v1283_v24 = vld [vmem:[%s1512_s3] sm:$0xff]  }
  0x2d   :  { %1081 = vmatpush3.bf16.msra.mxu0 %v1245_v26  ;;  %v56_v15 = vld [vmem:[%s1509_s0 + $0x78] sm:$0xff]  ;;  %v63_v23 = vpack.c.bf16 %v55_v22, %v47_v20  ;;  %v1284_v26 = vld [vmem:[%s1512_s3 + $0x8] sm:$0xff]   ;;  %v1291_v33 = vld [vmem:[%s1514_s5] sm:$0xff]  }
  0x2e   :  { %1103 = vmatpush3.bf16.msra.mxu1 %v1246_v27  ;;  %1082 = vmatprep.subr.bf16.mxu0 %v1247_v28  ;;  %v64_v17 = vpack.c.bf16 %v56_v15, %v48_v14  ;;  %v1285_v27 = vld [vmem:[%s1512_s3 + $0x10] sm:$0xff]   ;;  %v1286_v28 = vld [vmem:[%s1512_s3 + $0x18] sm:$0xff]   ;;  %v1292_v34 = vld [vmem:[%s1514_s5 + $0x8] sm:$0xff]  }
  0x2f   :  { %1104 = vmatprep.subr.bf16.mxu1 %v1248_v29  ;;  %v1287_v29 = vld [vmem:[%s1512_s3 + $0x20] sm:$0xff]   ;;  %v1290_v32 = vld [vmem:[%s1512_s3 + $0x38] sm:$0xff]   ;;  %v1293_v35 = vld [vmem:[%s1514_s5 + $0x10] sm:$0xff]  }
  0x30   :  { %v1294_v36 = vld [vmem:[%s1514_s5 + $0x18] sm:$0xff]   ;;  %v1295_v37 = vld [vmem:[%s1514_s5 + $0x20] sm:$0xff]   ;;  %v1296_v38 = vld [vmem:[%s1514_s5 + $0x28] sm:$0xff]  }
  0x31   :  { %1083 = vmatpush3.bf16.msra.mxu0 %v1249_v30  ;;  %v1288_v30 = vld [vmem:[%s1512_s3 + $0x28] sm:$0xff]   ;;  %v985_v41 = vld [vmem:[%s1511_s2] ss:$0 sm:$0xff]  ;;  %v1298_v12 = vld [vmem:[%s1514_s5 + $0x38] sm:$0xff]  }
  0x32   :  { %1105 = vmatpush3.bf16.msra.mxu1 %v1250_v31  ;;  %1112 = vmatprep.subr.bf16.mxu0 %v1251_v44  ;;  %v1289_v31 = vld [vmem:[%s1512_s3 + $0x30] sm:$0xff]   ;;  %v1050_v13 = vld [vmem:[%s1513_s4] ss:$0 sm:$0xff] }
  0x33   :  { %1134 = vmatprep.subr.bf16.mxu1 %v1252_v45 }
  0x34   :  { %617 = vmatmul.mubr.bf16.vlgmr.msra.gmra.mrb[0].mxu0 %v57_v40 }
  0x35   :  { %658 = vmatmul.mubr.bf16.vlgmr.msra.gmra.mrb[0].mxu1 %v59_v43  ;;  %1113 = vmatpush3.bf16.msra.mxu0 %v1253_v46 }
  0x36   :  { %1135 = vmatpush3.bf16.msra.mxu1 %v1254_v47  ;;  %1114 = vmatprep.subr.bf16.mxu0 %v1255_v48 }
  0x37   :  { %1136 = vmatprep.subr.bf16.mxu1 %v1256_v49  ;;  %698 = vmatprep.mubr.bf16.mxu0 %v62_v16 }
  0x38   :  { %739 = vmatprep.mubr.bf16.mxu1 %v64_v17 }
  0x39   :  { %1115 = vmatpush3.bf16.msra.mxu0 %v1257_v50 }
  0x3a   :  { %1137 = vmatpush3.bf16.msra.mxu1 %v1258_v51  ;;  %1116 = vmatprep.subr.bf16.mxu0 %v1259_v52 }
  0x3b   :  { %1138 = vmatprep.subr.bf16.mxu1 %v1260_v53 }
  0x3d   :  { %1117 = vmatpush3.bf16.msra.mxu0 %v1261_v54 }
  0x3e   :  { %1139 = vmatpush3.bf16.msra.mxu1 %v1262_v55  ;;  %1118 = vmatprep.subr.bf16.mxu0 %v1263_v56 }
  0x3f   :  { %1140 = vmatprep.subr.bf16.mxu1 %v1264_v57 }
  0x41   :  { %1119 = vmatpush3.bf16.msra.mxu0 %v1265_v58 }
  0x42   :  { %1141 = vmatpush3.bf16.msra.mxu1 %v1266_v59  ;;  %1120 = vmatprep.subr.bf16.mxu0 %v1267_v60 }
  0x43   :  { %1142 = vmatprep.subr.bf16.mxu1 %v1268_v61 }
  0x45   :  { %1121 = vmatpush3.bf16.msra.mxu0 %v1269_v62 }
  0x46   :  { %1143 = vmatpush3.bf16.msra.mxu1 %v1270_v63  ;;  %1122 = vmatprep.subr.bf16.mxu0 %v1271_v0 }
  0x47   :  { %1144 = vmatprep.subr.bf16.mxu1 %v1272_v1 }
  0x49   :  { %1123 = vmatpush3.bf16.msra.mxu0 %v1273_v2 }
  0x4a   :  { %1145 = vmatpush3.bf16.msra.mxu1 %v1274_v3  ;;  %1124 = vmatprep.subr.bf16.mxu0 %v1275_v4 }
  0x4b   :  { %1146 = vmatprep.subr.bf16.mxu1 %v1276_v5 }
  0x4d   :  { %1125 = vmatpush3.bf16.msra.mxu0 %v1277_v6 }
  0x4e   :  { %1147 = vmatpush3.bf16.msra.mxu1 %v1278_v7  ;;  %1126 = vmatprep.subr.bf16.mxu0 %v1279_v8 }
  0x4f   :  { %1148 = vmatprep.subr.bf16.mxu1 %v1280_v9 }
  0x51   :  { %1127 = vmatpush3.bf16.msra.mxu0 %v1281_v10 }
  0x52   :  { %1149 = vmatpush3.bf16.msra.mxu1 %v1282_v11  ;;  %1174 = vmatprep.subr.bf16.mxu0 %v1326_v25  ;;  %v1297_v11 = vld [vmem:[%s1514_s5 + $0x30] sm:$0xff]  }
  0x53   :  { %1194 = vmatprep.subr.bf16.mxu1 %v1326_v25 }
  0x54   :  { %699 = vmatmul.mubr.bf16.vlgmr.msra.gmra.mrb[4].mxu0 %v61_v21 }
  0x55   :  { %740 = vmatmul.mubr.bf16.vlgmr.msra.gmra.mrb[4].mxu1 %v63_v23  ;;  %1175 = vmatpush3.bf16.msra.mxu0 %v1283_v24  ;;  %v1059_v23 = vld [vmem:[%s1515_s6] ss:$0 sm:$0xff] }
  0x56   :  { %1176 = vmatprep.subr.bf16.mxu0 %v1326_v25  ;;  %1190 = vmatprep.mubr.msk.bf16.mxu0 %vm1327_vm0, %v1326_v25 }
  0x57   :  { %1210 = vmatprep.mubr.msk.bf16.mxu1 %vm1327_vm0, %v1326_v25  ;;  %1195 = vmatpush3.bf16.msra.mxu1 %v1291_v33 }
  0x58   :  { %1196 = vmatprep.subr.bf16.mxu1 %v1326_v25 }
  0x59   :  { %1177 = vmatpush3.bf16.msra.mxu0 %v1284_v26 }
  0x5a   :  { %1178 = vmatprep.subr.bf16.mxu0 %v1326_v25 }
  0x5b   :  { %1197 = vmatpush3.bf16.msra.mxu1 %v1292_v34 }
  0x5c   :  { %1198 = vmatprep.subr.bf16.mxu1 %v1326_v25 }
  0x5d   :  { %1179 = vmatpush3.bf16.msra.mxu0 %v1285_v27 }
  0x5e   :  { %1180 = vmatprep.subr.bf16.mxu0 %v1326_v25 }
  0x5f   :  { %1199 = vmatpush3.bf16.msra.mxu1 %v1293_v35 }
  0x60   :  { %1200 = vmatprep.subr.bf16.mxu1 %v1326_v25 }
  0x61   :  { %1181 = vmatpush3.bf16.msra.mxu0 %v1286_v28 }
  0x62   :  { %1182 = vmatprep.subr.bf16.mxu0 %v1326_v25 }
  0x63   :  { %1201 = vmatpush3.bf16.msra.mxu1 %v1294_v36 }
  0x64   :  { %1202 = vmatprep.subr.bf16.mxu1 %v1326_v25 }
  0x65   :  { %1183 = vmatpush3.bf16.msra.mxu0 %v1287_v29 }
  0x66   :  { %1184 = vmatprep.subr.bf16.mxu0 %v1326_v25 }
  0x67   :  { %1203 = vmatpush3.bf16.msra.mxu1 %v1295_v37 }
  0x68   :  { %1204 = vmatprep.subr.bf16.mxu1 %v1326_v25 }
  0x69   :  { %1185 = vmatpush3.bf16.msra.mxu0 %v1288_v30 }
  0x6a   :  { %1186 = vmatprep.subr.bf16.mxu0 %v1326_v25 }
  0x6b   :  { %1205 = vmatpush3.bf16.msra.mxu1 %v1296_v38 }
  0x6c   :  { %1206 = vmatprep.subr.bf16.mxu1 %v1326_v25 }
  0x6d   :  { %1187 = vmatpush3.bf16.msra.mxu0 %v1289_v31 }
  0x6e   :  { %1188 = vmatprep.subr.bf16.mxu0 %v1326_v25 }
  0x6f   :  { %1207 = vmatpush3.bf16.msra.mxu1 %v1297_v11 }
  0x70   :  { %1208 = vmatprep.subr.bf16.mxu1 %v1326_v25 }
  0x71   :  { %1189 = vmatpush3.bf16.msra.mxu0 %v1290_v32 }
  0x73   :  { %1209 = vmatpush3.bf16.msra.mxu1 %v1298_v12 }
 0x107   :  { %v1084_v39 = vpop.f32.mrb[0].mxu0 }
 0x108   :  { %v1106_v40 = vpop.f32.mrb[0].mxu1  ;;  %v1085_v42 = vpop.f32.mrb[1].mxu0 }
 0x109   :  { %v1086_v43 = vadd.f32 %v1085_v42, %v1084_v39  ;;  %v1107_v44 = vpop.f32.mrb[1].mxu1  ;;  %v1087_v45 = vpop.f32.mrb[2].mxu0 }
 0x10a   :  { %v1108_v46 = vadd.f32 %v1107_v44, %v1106_v40  ;;  %v1109_v47 = vpop.f32.mrb[2].mxu1  ;;  %v1088_v48 = vpop.f32.mrb[3].mxu0 }
 0x10b   :  { %v619_v49 = vadd.f32 %v1086_v43, %v985_v41  ;;  %v1089_v50 = vadd.f32 %v1088_v48, %v1087_v45  ;;  %v1110_v51 = vpop.f32.mrb[3].mxu1 }
 0x10c   :  { %v1111_v52 = vadd.f32 %v1110_v51, %v1109_v47 }
 0x10d   :  { %v660_v53 = vadd.f32 %v1108_v46, %v619_v49  ;;  %v622_v54 = vadd.f32 %v1089_v50, %v985_v41 }
 0x10f   :  { %v663_v55 = vadd.f32 %v1111_v52, %v622_v54 }
 0x127   :  { %v1128_v56 = vpop.f32.mrb[4].mxu0 }
 0x128   :  { %v1150_v57 = vpop.f32.mrb[4].mxu1  ;;  %v1129_v58 = vpop.f32.mrb[5].mxu0 }
 0x129   :  { %v1130_v59 = vadd.f32 %v1129_v58, %v1128_v56  ;;  %v1151_v60 = vpop.f32.mrb[5].mxu1  ;;  %v1131_v61 = vpop.f32.mrb[6].mxu0 }
 0x12a   :  { %v1152_v62 = vadd.f32 %v1151_v60, %v1150_v57  ;;  %v1153_v63 = vpop.f32.mrb[6].mxu1  ;;  %v1132_v0 = vpop.f32.mrb[7].mxu0 }
 0x12b   :  { %v701_v1 = vadd.f32 %v1130_v59, %v660_v53  ;;  %v1133_v2 = vadd.f32 %v1132_v0, %v1131_v61  ;;  %v1154_v3 = vpop.f32.mrb[7].mxu1 }
 0x12c   :  { %v1155_v4 = vadd.f32 %v1154_v3, %v1153_v63 }
 0x12d   :  { %v742_v5 = vadd.f32 %v1152_v62, %v701_v1  ;;  %v704_v6 = vadd.f32 %v1133_v2, %v663_v55 }
 0x12f   :  { %v745_v7 = vadd.f32 %v1155_v4, %v704_v6  ;;  %v748_v8 = vmax.f32 %v742_v5, 0.0 }
 0x131   :  { %v749_v9 = vmax.f32 %v745_v7, 0.0 }
 0x133   :  { %v750_v10 = vpack.c.bf16 %v749_v9, %v748_v8 }
 0x135   :  { %1191 = vmatmul.mubr.bf16.vlgmr.msra.gmra.mrb[8].mxu0 %v750_v10 }
 0x208   :  { %v856_v14 = vpop.f32.mrb[8].mxu0 }
 0x209   :  { %v857_v15 = vadd.f32 %v1050_v13, %v856_v14  ;;  %v1192_v16 = vpop.f32.mrb[9].mxu0 }
 0x20a   :  { %v859_v17 = vpop.f32.mrb[10].mxu0 }
 0x20b   :  { %v860_v18 = vadd.f32 %v1050_v13, %v859_v17  ;;  %v1193_v19 = vpop.f32.mrb[11].mxu0  ;;  %v863_v20 = vmax.f32 %v857_v15, 0.0 }
 0x20d   :  { %v864_v21 = vmax.f32 %v860_v18, 0.0 }
 0x20f   :  { %v865_v22 = vpack.c.bf16 %v864_v21, %v863_v20 }
 0x211   :  { %1211 = vmatmul.mubr.bf16.vlgmr.msra.gmra.mrb[8].mxu1 %v865_v22 }
 0x2e4   :  { %v971_v24 = vpop.f32.mrb[8].mxu1 }
 0x2e5   :  { %v972_v25 = vadd.f32 %v1059_v23, %v971_v24  ;;  %v1212_v26 = vpop.f32.mrb[9].mxu1 }
 0x2e6   :  { %v974_v27 = vpop.f32.mrb[10].mxu1 }
 0x2e7   :  { %978 = vst [vmem:[%s1516_s7] sm:$0xff] %v972_v25  ;;  %v975_v28 = vadd.f32 %v1059_v23, %v974_v27  ;;  %v1213_v29 = vpop.f32.mrb[11].mxu1 }
 0x2e9   :  { %979 = vst [vmem:[%s1516_s7 + $0x8] sm:$0xff] %v975_v28 }
 0x2ea   :  { %984 = vsyncpa [#allocation3], 1 }

</bundles_post_ra>
